<compile_context>
chip_gen: v7x
topology: tpu7x:2x2x1
jax: 0.10.0
libtpu: 0.0.40
codegen_flags: <defaults>
</compile_context>

<pallas_src>
import jax
import jax.numpy as jnp
from jax.experimental import pallas as pl
from jax.experimental.pallas import tpu as pltpu


def _round_up(x: int, m: int) -> int:
    return ((x + m - 1) // m) * m


def activation_layer_kernel(x_ref, w_ref, brow_ref, o_ref):
    # x_ref:    (TB, F_in)       -- batch tile (pipelined)
    # w_ref:    (F_in, F_out_p)  -- resident across the grid
    # brow_ref: (1,  F_out_p)    -- resident (bias @ weight), broadcast over rows
    # o_ref:    (TB, F_out_p)    -- lane-dense output tile
    acc = jnp.dot(x_ref[...], w_ref[...], preferred_element_type=jnp.float32)  # MXU
    o_ref[...] = (acc - brow_ref[...]).astype(o_ref.dtype)                     # VPU


def _pick_batch_tile(batch, f_in, f_out_p, itemsize,
                     max_tb=1024, vmem_budget=24 * 1024 * 1024):
    """Largest power-of-two batch tile (>=8) whose double-buffered working set
    plus resident weight/bias fits the VMEM budget."""
    resident = (f_in * f_out_p + f_out_p) * itemsize
    tb_cap = min(max_tb, _round_up(batch, 8))
    tb = 8
    cand = 8
    while cand <= tb_cap:
        working = 2 * cand * (f_in + f_out_p) * itemsize + resident
        if working <= vmem_budget:
            tb = cand
        cand *= 2
    return tb


def activation_layer_forward(x, weight, bias, *, max_block_batch=1024):
    """y = (x - bias) @ weight   (bias broadcast over the batch dimension)."""
    batch, f_in = x.shape
    f_in_w, f_out = weight.shape
    assert f_in == f_in_w, (f_in, f_in_w)

    # ---- Fold bias into the matmul: (x - b) @ W == x @ W - (b @ W). ------
    bias_row = jnp.dot(bias.reshape(1, f_in).astype(jnp.float32),
                       weight.astype(jnp.float32)).astype(x.dtype)   # (1, f_out)

    # ---- Lane-dense output: pad out_features to a multiple of 128. ------
    f_out_p = _round_up(max(f_out, 1), 128)
    if f_out_p != f_out:
        weight_p = jnp.pad(weight, ((0, 0), (0, f_out_p - f_out)))
        bias_row_p = jnp.pad(bias_row, ((0, 0), (0, f_out_p - f_out)))
    else:
        weight_p, bias_row_p = weight, bias_row

    # ---- Batch tiling: pipelining + megacore, sized for VMEM. ------------
    itemsize = jnp.dtype(x.dtype).itemsize
    tb = _pick_batch_tile(batch, f_in, f_out_p, itemsize, max_tb=max_block_batch)
    batch_p = _round_up(batch, tb)
    x_p = jnp.pad(x, ((0, batch_p - batch), (0, 0))) if batch_p != batch else x
    grid = (batch_p // tb,)

    cost = pl.CostEstimate(
        flops=2 * batch_p * f_in * f_out_p + batch_p * f_out_p,
        transcendentals=0,
        bytes_accessed=itemsize * (batch_p * f_in + f_in * f_out_p
                                   + batch_p * f_out_p + f_out_p),
    )

    out_p = pl.pallas_call(
        activation_layer_kernel,
        out_shape=jax.ShapeDtypeStruct((batch_p, f_out_p), x.dtype),
        grid_spec=pl.GridSpec(
            grid=grid,
            in_specs=[
                pl.BlockSpec((tb, f_in), lambda i: (i, 0)),        # x: tiled over batch
                pl.BlockSpec((f_in, f_out_p), lambda i: (0, 0)),   # weight: resident
                pl.BlockSpec((1, f_out_p), lambda i: (0, 0)),      # bias@W row: resident
            ],
            out_specs=pl.BlockSpec((tb, f_out_p), lambda i: (i, 0)),
        ),
        compiler_params=pltpu.CompilerParams(
            dimension_semantics=("parallel",),   # batch rows independent -> dual-TC on v7x
            vmem_limit_bytes=64 * 1024 * 1024,
        ),
        cost_estimate=cost,
    )(x_p, weight_p, bias_row_p)

    # Slice away batch / lane padding.
    return out_p[:batch, :f_out]


if __name__ == "__main__":
    batch, in_features, out_features = 8, 16, 32

    key = jax.random.PRNGKey(0)
    kx, kw, kb = jax.random.split(key, 3)

    x = jax.random.normal(kx, (batch, in_features), dtype=jnp.float32)
    weight = jax.random.normal(kw, (in_features, out_features), dtype=jnp.float32) * 0.1
    bias = jax.random.normal(kb, (in_features,), dtype=jnp.float32) * 0.1

    y = activation_layer_forward(x, weight, bias)
    y = jax.block_until_ready(y)

    # Reference check in plain JAX.
    y_ref = (x - bias[None, :]) @ weight
    assert y.shape == (batch, out_features)
    assert jnp.allclose(y, y_ref, atol=1e-5, rtol=1e-5)

    print("KERNEL_OK")
</pallas_src>

<mosaic_0001>
module attributes {stable_mosaic.version = 11 : i64} {
  func.func @activation_layer_kernel(%arg0: i32, %arg1: memref<8x16xf32, #tpu.memory_space<vmem>>, %arg2: memref<16x128xf32, #tpu.memory_space<vmem>>, %arg3: memref<1x128xf32, #tpu.memory_space<vmem>>, %arg4: memref<8x128xf32, #tpu.memory_space<vmem>>) attributes {dimension_semantics = [#tpu.dimension_semantics<parallel>], iteration_bounds = array<i64: 1>, scalar_prefetch = 0 : i64, scratch_operands = 0 : i64, tpu.core_type = #tpu.core_type<tc>, window_params = [{transform_indices = @transform_0, window_bounds = array<i64: 8, 16>}, {pipeline_mode = #tpu.pipeline_mode<synchronous>, transform_indices = @transform_1, window_bounds = array<i64: 16, 128>}, {pipeline_mode = #tpu.pipeline_mode<synchronous>, transform_indices = @transform_2, window_bounds = array<i64: 1, 128>}, {transform_indices = @transform_3, window_bounds = array<i64: 8, 128>}]} {
    %c0 = arith.constant 0 : index
    %c0_0 = arith.constant 0 : index
    %0 = vector.load %arg1[%c0, %c0_0] : memref<8x16xf32, #tpu.memory_space<vmem>>, vector<8x16xf32>
    %c0_1 = arith.constant 0 : index
    %c0_2 = arith.constant 0 : index
    %1 = vector.load %arg2[%c0_1, %c0_2] : memref<16x128xf32, #tpu.memory_space<vmem>>, vector<16x128xf32>
    %cst = arith.constant dense<0.000000e+00> : vector<8x128xf32>
    %2 = tpu.matmul %0, %1, %cst {dimension_numbers = #tpu.dot_dimension_numbers<[1], [0], [0], [1], [0, 0, 1, 1], [], []>} : vector<8x16xf32>, vector<16x128xf32>, vector<8x128xf32> -> vector<8x128xf32>
    %c0_3 = arith.constant 0 : index
    %c0_4 = arith.constant 0 : index
    %3 = vector.load %arg3[%c0_3, %c0_4] : memref<1x128xf32, #tpu.memory_space<vmem>>, vector<1x128xf32>
    %4 = vector.broadcast %3 : vector<1x128xf32> to vector<8x128xf32>
    %5 = arith.subf %2, %4 : vector<8x128xf32>
    %c0_5 = arith.constant 0 : index
    %c0_6 = arith.constant 0 : index
    %6 = vector.load %arg4[%c0_5, %c0_6] : memref<8x128xf32, #tpu.memory_space<vmem>>, vector<8x128xf32>
    tpu.vector_store %arg4[%c0_5, %c0_6], %5 {strides = array<i32>} : memref<8x128xf32, #tpu.memory_space<vmem>>, vector<8x128xf32>,
    return
  }
  func.func @transform_0(%arg0: i32) -> (i32, i32) {
    %c0_i32 = arith.constant 0 : i32
    %c0_i32_0 = arith.constant 0 : i32
    return %arg0, %c0_i32 : i32, i32
  }
  func.func @transform_1(%arg0: i32) -> (i32, i32) {
    %c0_i32 = arith.constant 0 : i32
    %c0_i32_0 = arith.constant 0 : i32
    %c0_i32_1 = arith.constant 0 : i32
    return %c0_i32, %c0_i32_0 : i32, i32
  }
  func.func @transform_2(%arg0: i32) -> (i32, i32) {
    %c0_i32 = arith.constant 0 : i32
    %c0_i32_0 = arith.constant 0 : i32
    %c0_i32_1 = arith.constant 0 : i32
    return %c0_i32, %c0_i32_0 : i32, i32
  }
  func.func @transform_3(%arg0: i32) -> (i32, i32) {
    %c0_i32 = arith.constant 0 : i32
    %c0_i32_0 = arith.constant 0 : i32
    return %arg0, %c0_i32 : i32, i32
  }
}

</mosaic_0001>

<bundles_post_ra>
// kernel: tpu_custom_call.1
= control target key start
LH: loop header
LB: loop body
LE: loop exit
PB: predicated region body
PF: predicated region fallthrough
CT: control target
= control target key end

     0   :  { %8 = vsyncpa [#allocation3], 0  ;;  %s349_s0 = inlined_call_operand.hbm [shape: f32[8,16], index: 0, kind: input, shape index: {}]   ;;  %s350_s1 = inlined_call_operand.hbm [shape: f32[16,128], index: 1, kind: input, shape index: {}]   ;;  %s351_s2 = inlined_call_operand.hbm [shape: f32[1,128], index: 2, kind: input, shape index: {}]   ;;  %s352_s3 = inlined_call_operand.hbm [shape: f32[8,128], index: 3, kind: output, shape index: {}]  }
   0x1   :  { %9 = vsyncpa [#allocation6], 0 }
   0x2   :  { %10 = vsyncpa [#allocation4], 0  ;;  %s272_s12 = smov [#allocation5]   ;;  %s178_s16 = scalar_lea.hbm %s350_s1, 256 }
   0x3   :  { %s26_s13 = sshll.u32 %s272_s12, 4  ;;  %p179_p0 = scmp.ne.s32.totalorder %s350_s1, %s178_s16  ;;  %s27_s13 = int_to_ptr.vmem [resolvable:$true] %s26_s13 }
   0x4   :  { %p182_p1 = scmp.lt.u32.totalorder %s178_s16, %s350_s1 }
   0x6   :  { %p184_p2 = pnand %p182_p1, %p179_p0 }
   0x8   :  { %187 = shalt.err (!%p184_p2)
}
   0x9   :  { %s188_s21 = scalar_lea.vmem %s27_s13, 256  ;;  %p193_p4 = scmp.lt.s32.totalorder %s27_s13, %s27_s13 }
   0xa   :  { %p189_p3 = scmp.ne.s32.totalorder %s27_s13, %s188_s21  ;;  %p194_p5 = scmp.lt.s32.totalorder %s188_s21, %s188_s21 }
   0xc   :  { %p195_p6 = por %p194_p5, %p193_p4 }
   0xe   :  { %p196_p7 = pnand %p195_p6, %p189_p3 }
  0x10   :  { %199 = shalt.err (!%p196_p7)
}
  0x11   :  { %s273_s22 = smov 128   ;;  %s274_s23 = smov 8  }
  0x12   :  { %32 = dma.hbm_to_vmem [thread:$0]  %s350_s1, 256, %s27_s13, [#allocation6], %s273_s22, %s273_s22, %s274_s23  }
  0x13   :  { %s275_s26 = smov [#allocation2]   ;;  %s276_s28 = smov [#allocation7]  }
  0x14   :  { %s17_s27 = sshll.u32 %s275_s26, 4  ;;  %s39_s29 = sshll.u32 %s276_s28, 4  ;;  %s18_s27 = int_to_ptr.vmem [resolvable:$true] %s17_s27  ;;  %s40_s29 = int_to_ptr.vmem [resolvable:$true] %s39_s29 }
  0x15   :  { %s200_s5 = scalar_lea.hbm %s349_s0, 128 }
  0x16   :  { %p201_p8 = scmp.ne.s32.totalorder %s349_s0, %s200_s5  ;;  %p204_p9 = scmp.lt.u32.totalorder %s200_s5, %s349_s0 }
  0x18   :  { %p206_p10 = pnand %p204_p9, %p201_p8 }
  0x1a   :  { %209 = shalt.err (!%p206_p10)
}
  0x1b   :  { %s210_s1 = scalar_lea.vmem %s18_s27, 128  ;;  %p215_p12 = scmp.lt.s32.totalorder %s18_s27, %s18_s27 }
  0x1c   :  { %p211_p11 = scmp.ne.s32.totalorder %s18_s27, %s210_s1  ;;  %p216_p13 = scmp.lt.s32.totalorder %s210_s1, %s210_s1 }
  0x1e   :  { %p217_p0 = por %p216_p13, %p215_p12 }
  0x20   :  { %p218_p1 = pnand %p217_p0, %p211_p11 }
  0x22   :  { %221 = shalt.err (!%p218_p1)
}
  0x23   :  { %20 = dma.hbm_to_vmem [thread:$0]  %s349_s0, 128, %s18_s27, [#allocation3]  }
  0x24   :  { %s222_s14 = scalar_lea.hbm %s351_s2, 16 }
  0x25   :  { %p223_p2 = scmp.ne.s32.totalorder %s351_s2, %s222_s14  ;;  %p226_p3 = scmp.lt.u32.totalorder %s222_s14, %s351_s2 }
  0x27   :  { %p228_p4 = pnand %p226_p3, %p223_p2 }
  0x29   :  { %231 = shalt.err (!%p228_p4)
}
  0x2a   :  { %s232_s19 = scalar_lea.vmem %s40_s29, 16  ;;  %s236_s20 = scalar_lea.vmem %s40_s29, 32 }
  0x2b   :  { %p233_p5 = scmp.ne.s32.totalorder %s40_s29, %s232_s19  ;;  %p237_p6 = scmp.lt.s32.totalorder %s40_s29, %s40_s29 }
  0x2c   :  { %p238_p7 = scmp.lt.s32.totalorder %s236_s20, %s232_s19 }
  0x2e   :  { %p239_p8 = por %p238_p7, %p237_p6 }
  0x30   :  { %p240_p9 = pnand %p239_p8, %p233_p5 }
  0x32   :  { %243 = shalt.err (!%p240_p9)
}
  0x33   :  { %42 = dma.hbm_to_vmem [thread:$0]  %s351_s2, 16, %s40_s29, [#allocation6]  }
  0x34   :  { %266 = dma.done.wait [#allocation3], 128  }
  0x35   :  { %267 = vsyncadd [#allocation3], 4294967168 }
  0x36   :  { %268 = dma.done.wait [#allocation6], 272  }
  0x37   :  { %269 = vsyncadd [#allocation6], 4294967024  ;;  %v277_v0 = vmov 0.0|0.0   ;;  %vm278_vm0 = vmmov 0   ;;  %v279_v1 = vmov 0.0   ;;  %v53_v2 = vld [vmem:[#allocation5] sm:$0xff] }
  0x38   :  { %166 = vmatprep.subr.bf16.mxu0 %v277_v0  ;;  %163 = vmatprep.mubr.msk.f32.mxu0 %vm278_vm0, %v279_v1  ;;  %v54_v3 = vld [vmem:[#allocation5 + $0x8] sm:$0xff]  ;;  %v52_v5 = vld [vmem:[#allocation2] sm:$0xff]  ;;  %vm55_vm1 = vcmask 130048   ;;  %v155_v6 = vld [vmem:[#allocation7] ss:$0 sm:$0xff]  ;;  %s280_s22 = smov [#allocation8]  }
  0x39   :  { %v167_v4 = vpack.c.bf16 %v54_v3, %v53_v2  ;;  %s144_s23 = sshll.u32 %s280_s22, 4  ;;  %s145_s23 = int_to_ptr.vmem [resolvable:$true] %s144_s23 }
  0x3a   :  { %s244_s2 = scalar_lea.vmem %s145_s23, 128  ;;  %p249_p11 = scmp.lt.s32.totalorder %s145_s23, %s145_s23 }
  0x3b   :  { %168 = vmatpush3.bf16.msra.mxu0 %v167_v4  ;;  %p245_p10 = scmp.ne.s32.totalorder %s145_s23, %s244_s2  ;;  %p250_p12 = scmp.lt.s32.totalorder %s244_s2, %s244_s2 }
  0x3d   :  { %p251_p13 = por %p250_p12, %p249_p11 }
  0x3e   :  { %164 = vmatmul.mubr.msk.f32.vlgmr.msra.gmra.mrb[0].mxu0 %vm55_vm1, %v52_v5 }
  0x3f   :  { %p252_p0 = pnand %p251_p13, %p245_p10 }
 0x111   :  { %v125_v7 = vpop.f32.mrb[0].mxu0 }
 0x112   :  { %v136_v8 = vsub.f32 %v125_v7, %v155_v6  ;;  %v165_v9 = vpop.f32.mrb[1].mxu0 }
 0x114   :  { %137 = vst [vmem:[#allocation8] sm:$0xff] %v136_v8 }
 0x115   :  { %255 = shalt.err (!%p252_p0)
}
 0x116   :  { %s256_s26 = scalar_lea.hbm %s352_s3, 128 }
 0x117   :  { %p257_p1 = scmp.ne.s32.totalorder %s352_s3, %s256_s26  ;;  %p260_p2 = scmp.lt.u32.totalorder %s256_s26, %s352_s3 }
 0x119   :  { %p262_p3 = pnand %p260_p2, %p257_p1 }
 0x11b   :  { %265 = shalt.err (!%p262_p3)
}
 0x11c   :  { %147 = dma.vmem_to_hbm [thread:$0]  %s145_s23, 128, %s352_s3, [#allocation4]  }
 0x11d   :  { %270 = dma.done.wait [#allocation4], 128  }
 0x11e   :  { %271 = vsyncadd [#allocation4], 4294967168 }
 0x11f   :  { %151 = vsyncpa [#allocation3], 1 }
 0x120   :  { %152 = vsyncpa [#allocation6], 1 }
 0x121   :  { %153 = vsyncpa [#allocation4], 1 }

</bundles_post_ra>
